<compile_context>
chip_gen: v6e
topology: v6e:2x2x1
jax: 0.10.0
libtpu: 0.0.40
codegen_flags: <defaults>
</compile_context>

<pallas_src>
import functools

import jax
import jax.numpy as jnp
from jax.experimental import pallas as pl
from jax.experimental.pallas import tpu as pltpu

_LANE = 128
_SUBLANE = 8
_MAX_BLOCK_BYTES = 2 * 1024 * 1024      # 2 MiB tile per grid step (double-buffered: 4 MiB)
_MIN_PALLAS_ELEMS = 256 * 1024          # below ~1 MiB f32, a fused XLA reduce is faster

_NUM_CORES_CACHE = None


def _num_tensorcores():
    """Per-chip TensorCore count (1 on v5e/v6e, 2 on megacore/v7x). Safe default 1."""
    global _NUM_CORES_CACHE
    if _NUM_CORES_CACHE is not None:
        return _NUM_CORES_CACHE
    cores = 1
    try:
        info = pltpu.get_tpu_info()
        for attr in ("num_cores", "core_count", "tensorcore_count",
                     "num_tensorcores", "cores_per_chip"):
            v = getattr(info, attr, None)
            if isinstance(v, int) and v >= 1:
                cores = int(v)
                break
    except Exception:
        cores = 1
    _NUM_CORES_CACHE = max(1, min(2, cores))
    return _NUM_CORES_CACHE


def _sublane_multiple(dtype):
    """Packed-sublane multiple: 8 for 4-byte, 16 for 2-byte, 32 for 1-byte dtypes."""
    itemsize = jnp.dtype(dtype).itemsize
    return _SUBLANE * max(1, 4 // max(1, itemsize))


def _plan(n_elems, dtype, num_cores, max_block_bytes=_MAX_BLOCK_BYTES):
    """Choose (block_rows, n_split, blocks_per_split, total_padded_rows)."""
    sub = _sublane_multiple(dtype)
    itemsize = jnp.dtype(dtype).itemsize
    max_rows = max(sub, (max_block_bytes // (_LANE * itemsize)) // sub * sub)
    rows_needed = pl.cdiv(n_elems, _LANE)
    block_rows = min(max_rows, ((rows_needed + sub - 1) // sub) * sub)
    n_blocks = pl.cdiv(rows_needed, block_rows)
    # Only split across TensorCores when the chip actually has >1 TC and there
    # is at least one block per core.
    n_split = num_cores if (num_cores > 1 and n_blocks >= num_cores) else 1
    n_blocks = ((n_blocks + n_split - 1) // n_split) * n_split
    blocks_per_split = n_blocks // n_split
    total_rows = n_blocks * block_rows
    return block_rows, n_split, blocks_per_split, total_rows


def _pack(flat, total_rows):
    """Zero-pad a 1-D buffer and reshape to (total_rows, 128). sum(x^2) unchanged."""
    pad = total_rows * _LANE - flat.shape[0]
    if pad:
        flat = jnp.pad(flat, (0, pad))
    return flat.reshape(total_rows, _LANE)


def _make_sumsq_kernel(red_axis):
    """Kernel: accumulate sum(x^2) of one (block_rows,128) tile into a VMEM accumulator."""

    def kernel(x_ref, o_ref, acc_ref):
        i = pl.program_id(red_axis)

        @pl.when(i == 0)
        def _():
            acc_ref[...] = jnp.zeros_like(acc_ref)

        x = x_ref[...].astype(jnp.float32)
        xx = x * x
        # Fold (block_rows,128) -> (8,128): pure VALU vreg adds (no per-step XLU).
        acc_ref[...] += xx.reshape(-1, _SUBLANE, _LANE).sum(axis=0)

        @pl.when(i == pl.num_programs(red_axis) - 1)
        def _():
            # Dump the resident accumulator; the tiny final reduce is wrapper-side.
            o_ref[...] = acc_ref[...]

    return kernel


@functools.partial(jax.jit, static_argnums=(1, 2, 3))
def _sumsq_packed(x2d, block_rows, n_split, blocks_per_split):
    """sum(x2d**2) for a pre-packed (total_rows, 128) buffer via one pallas_call."""
    total_rows, lane = x2d.shape
    assert lane == _LANE
    itemsize = jnp.dtype(x2d.dtype).itemsize
    n_elems = total_rows * _LANE
    cost = pl.CostEstimate(
        flops=2 * n_elems,
        transcendentals=0,
        bytes_accessed=n_elems * itemsize + n_split * _SUBLANE * _LANE * 4,
    )

    if n_split == 1:
        # Single-TensorCore chips: plain 1-D reduction grid, no leading split axis.
        partial = pl.pallas_call(
            _make_sumsq_kernel(0),
            out_shape=jax.ShapeDtypeStruct((_SUBLANE, _LANE), jnp.float32),
            grid=(blocks_per_split,),
            in_specs=[pl.BlockSpec((block_rows, _LANE), lambda i: (i, 0))],
            out_specs=pl.BlockSpec((_SUBLANE, _LANE), lambda i: (0, 0)),
            scratch_shapes=[pltpu.VMEM((_SUBLANE, _LANE), jnp.float32)],
            compiler_params=pltpu.CompilerParams(
                dimension_semantics=("arbitrary",),
                vmem_limit_bytes=32 << 20,
            ),
            cost_estimate=cost,
        )(x2d)
    else:
        # Multi-TensorCore: leading "parallel" axis shards row-block ranges across
        # the cores; each core owns its own (8,128) partial output block.
        # TODO(synk): on v7x, pltpu.CORE_PARALLEL on the leading axis may be needed
        # for true cross-core sharding; verify in a trace before switching.
        partial = pl.pallas_call(
            _make_sumsq_kernel(1),
            out_shape=jax.ShapeDtypeStruct((n_split * _SUBLANE, _LANE), jnp.float32),
            grid=(n_split, blocks_per_split),
            in_specs=[pl.BlockSpec(
                (block_rows, _LANE),
                lambda c, i, bps=blocks_per_split: (c * bps + i, 0))],
            out_specs=pl.BlockSpec((_SUBLANE, _LANE), lambda c, i: (c, 0)),
            scratch_shapes=[pltpu.VMEM((_SUBLANE, _LANE), jnp.float32)],
            compiler_params=pltpu.CompilerParams(
                dimension_semantics=("parallel", "arbitrary"),
                vmem_limit_bytes=32 << 20,
            ),
            cost_estimate=cost,
        )(x2d)

    return jnp.sum(partial)


def _fused_sumsq(flat, num_cores=None, max_block_bytes=_MAX_BLOCK_BYTES):
    """sum(flat**2) for a 1-D fused weight buffer (single pallas_call)."""
    if num_cores is None:
        num_cores = _num_tensorcores()
    block_rows, n_split, bps, total_rows = _plan(
        int(flat.shape[0]), flat.dtype, num_cores, max_block_bytes)
    x2d = _pack(flat, total_rows)
    return _sumsq_packed(x2d, block_rows, n_split, bps)


def prepare_fused_conv_weights(named_parameters, num_cores=None):
    """Build fused, padded, 2-D per-dtype weight buffers ONCE (e.g. at init).

    Passing the result as `prepared=` to loss_with_l2_regularization removes the
    per-call concat/pad HBM traffic entirely.
    """
    if num_cores is None:
        num_cores = _num_tensorcores()
    selected = [(k, v) for k, v in named_parameters.items()
                if "conv" in k and "weight" in k]
    groups = {}
    for _, v in selected:
        groups.setdefault(jnp.dtype(v.dtype), []).append(jnp.ravel(v))
    prepared = []
    for dtype, flats in groups.items():
        fused = flats[0] if len(flats) == 1 else jnp.concatenate(flats)
        n = int(fused.shape[0])
        block_rows, n_split, bps, total_rows = _plan(n, dtype, num_cores)
        prepared.append({
            "x2d": _pack(fused, total_rows),
            "block_rows": block_rows,
            "n_split": n_split,
            "blocks_per_split": bps,
            "n_elems": n,
        })
    return prepared


def loss_with_l2_regularization(criterion, named_parameters, weight_decay=1e-5,
                                flag=True, *, prepared=None,
                                min_pallas_elems=_MIN_PALLAS_ELEMS):
    """JAX/Pallas equivalent of the PyTorch module's forward.

    `named_parameters` is a dict {name: array}, mirroring model.named_parameters().
    """
    wd_half = jnp.float32(weight_decay) * jnp.float32(0.5)
    selected = [(k, v) for k, v in named_parameters.items()
                if "conv" in k and "weight" in k]

    if flag:
        # Debug path: the per-parameter penalties are needed for display anyway,
        # so reuse their sum for the total (weights read from HBM exactly once).
        if not selected:
            return criterion + jnp.float32(0.0)
        penalties = jnp.stack([
            wd_half * jnp.sum(jnp.square(v.astype(jnp.float32).reshape(-1)))
            for _, v in selected])
        penalties = jax.block_until_ready(penalties)
        for (k, _), p in zip(selected, penalties):
            print("{} : {}".format(k, p))
        return criterion + jnp.sum(penalties)

    # Fast path: one fused Pallas reduction per parameter dtype.
    total_ss = jnp.float32(0.0)
    if prepared is not None:
        if not prepared:
            return criterion + jnp.float32(0.0)
        for g in prepared:
            if g["n_elems"] < min_pallas_elems:
                total_ss = total_ss + jnp.sum(jnp.square(g["x2d"].astype(jnp.float32)))
            else:
                total_ss = total_ss + _sumsq_packed(
                    g["x2d"], g["block_rows"], g["n_split"], g["blocks_per_split"])
        return criterion + wd_half * total_ss

    if not selected:
        return criterion + jnp.float32(0.0)

    num_cores = _num_tensorcores()
    bydtype = {}
    for _, v in selected:
        bydtype.setdefault(jnp.dtype(v.dtype), []).append(jnp.ravel(v))
    for _, flats in bydtype.items():
        fused = flats[0] if len(flats) == 1 else jnp.concatenate(flats)
        if fused.shape[0] < min_pallas_elems:
            # Tiny weight set: a fused XLA reduction beats concat+pad+kernel launch.
            total_ss = total_ss + jnp.sum(jnp.square(fused.astype(jnp.float32)))
        else:
            total_ss = total_ss + _fused_sumsq(fused, num_cores)

    return criterion + wd_half * total_ss


if __name__ == "__main__":
    key = jax.random.PRNGKey(0)
    keys = jax.random.split(key, 9)

    # Small APNN-wv3-like model parameters (conv weights are OIHW), deterministic init.
    named_params = {
        "conv1.weight": jax.random.normal(keys[0], (16, 9, 5, 5), jnp.float32) * 0.05,
        "conv1.bias":   jax.random.normal(keys[1], (16,), jnp.float32) * 0.01,
        "conv2.weight": jax.random.normal(keys[2], (8, 16, 3, 3), jnp.float32) * 0.05,
        "conv2.bias":   jax.random.normal(keys[3], (8,), jnp.float32) * 0.01,
        "conv3.weight": jax.random.normal(keys[4], (8, 8, 3, 3), jnp.float32) * 0.05,
        "conv3.bias":   jax.random.normal(keys[5], (8,), jnp.float32) * 0.01,
        # bf16 conv weight: exercises the per-dtype grouping + (16,128) packed tiling.
        "conv4.weight": (jax.random.normal(keys[6], (8, 8, 3, 3), jnp.float32) * 0.05
                         ).astype(jnp.bfloat16),
        # non-conv parameter: must be ignored by the name filter
        "bn.weight":    jnp.ones((16,), jnp.float32),
    }

    # `criterion` is the already-computed data loss (a scalar), e.g. an MSE value.
    criterion = jnp.abs(jax.random.normal(keys[7], (), jnp.float32))
    weight_decay = 1e-5

    # Pure-JAX reference check (matches the PyTorch per-parameter formula).
    ref = criterion
    for k, v in named_params.items():
        if "conv" in k and "weight" in k:
            ref = ref + weight_decay * (jnp.sum(v.astype(jnp.float32) ** 2) / 2)

    # 1) Default fast path: tiny weight set -> fused XLA fallback (no kernel launch).
    loss_fb = loss_with_l2_regularization(criterion, named_params, weight_decay,
                                          flag=False)
    # 2) Force the Pallas kernel at these small shapes.
    loss_pl = loss_with_l2_regularization(criterion, named_params, weight_decay,
                                          flag=False, min_pallas_elems=0)
    # 3) Buffers fused/padded once at init (no per-call concat+pad), Pallas kernel.
    prepared = prepare_fused_conv_weights(named_params)
    loss_prep = loss_with_l2_regularization(criterion, named_params, weight_decay,
                                            flag=False, prepared=prepared,
                                            min_pallas_elems=0)
    # 4) Coverage for the multi-block reduction grid + 2-way split path
    #    (correct on 1-TC chips too: the leading axis just iterates sequentially).
    big = jax.random.normal(keys[8], (8192,), jnp.float32) * 0.1
    ss = _fused_sumsq(big, num_cores=2, max_block_bytes=8 * 1024)
    ss_ref = jnp.sum(big ** 2)

    loss_fb, loss_pl, loss_prep, ss = jax.block_until_ready(
        (loss_fb, loss_pl, loss_prep, ss))

    assert jnp.allclose(loss_fb, ref, rtol=1e-5, atol=1e-6), (loss_fb, ref)
    assert jnp.allclose(loss_pl, ref, rtol=1e-5, atol=1e-6), (loss_pl, ref)
    assert jnp.allclose(loss_prep, ref, rtol=1e-5, atol=1e-6), (loss_prep, ref)
    assert jnp.allclose(ss, ss_ref, rtol=1e-5, atol=1e-6), (ss, ss_ref)
    print("KERNEL_OK")
</pallas_src>

<mosaic_0001>
module attributes {stable_mosaic.version = 11 : i64} {
  func.func @kernel(%arg0: i32, %arg1: memref<48x128xf32, #tpu.memory_space<vmem>>, %arg2: memref<8x128xf32, #tpu.memory_space<vmem>>, %arg3: memref<8x128xf32, #tpu.memory_space<vmem>>) attributes {dimension_semantics = [#tpu.dimension_semantics<arbitrary>], iteration_bounds = array<i64: 1>, scalar_prefetch = 0 : i64, scratch_operands = 1 : i64, tpu.core_type = #tpu.core_type<tc>, window_params = [{transform_indices = @transform_0, window_bounds = array<i64: 48, 128>}, {pipeline_mode = #tpu.pipeline_mode<synchronous>, transform_indices = @transform_1, window_bounds = array<i64: 8, 128>}]} {
    %c0_i32 = arith.constant 0 : i32
    %0 = arith.cmpi eq, %arg0, %c0_i32 : i32
    %1 = arith.extui %0 : i1 to i32
    %c0_i32_0 = arith.constant 0 : i32
    %2 = arith.cmpi ne, %1, %c0_i32_0 : i32
    scf.if %2 {
      %cst_8 = arith.constant 0.000000e+00 : f32
      %13 = vector.broadcast %cst_8 : f32 to vector<8x128xf32>
      %c0_9 = arith.constant 0 : index
      %c0_10 = arith.constant 0 : index
      %14 = vector.load %arg3[%c0_9, %c0_10] : memref<8x128xf32, #tpu.memory_space<vmem>>, vector<8x128xf32>
      tpu.vector_store %arg3[%c0_9, %c0_10], %13 {strides = array<i32>} : memref<8x128xf32, #tpu.memory_space<vmem>>, vector<8x128xf32>,
    } else {
    }
    %c0 = arith.constant 0 : index
    %c0_1 = arith.constant 0 : index
    %3 = vector.load %arg1[%c0, %c0_1] : memref<48x128xf32, #tpu.memory_space<vmem>>, vector<48x128xf32>
    %4 = arith.mulf %3, %3 : vector<48x128xf32>
    %c0_2 = arith.constant 0 : index
    %c0_3 = arith.constant 0 : index
    %5 = vector.load %arg3[%c0_2, %c0_3] : memref<8x128xf32, #tpu.memory_space<vmem>>, vector<8x128xf32>
    %6 = vector.shape_cast %4 : vector<48x128xf32> to vector<6x8x128xf32>
    %cst = arith.constant dense<0.000000e+00> : vector<8x128xf32>
    %7 = vector.multi_reduction <add>, %6, %cst [0] : vector<6x8x128xf32> to vector<8x128xf32>
    %8 = arith.addf %5, %7 : vector<8x128xf32>
    %c0_4 = arith.constant 0 : index
    %c0_5 = arith.constant 0 : index
    %9 = vector.load %arg3[%c0_4, %c0_5] : memref<8x128xf32, #tpu.memory_space<vmem>>, vector<8x128xf32>
    tpu.vector_store %arg3[%c0_4, %c0_5], %8 {strides = array<i32>} : memref<8x128xf32, #tpu.memory_space<vmem>>, vector<8x128xf32>,
    %c0_i32_6 = arith.constant 0 : i32
    %10 = arith.cmpi eq, %arg0, %c0_i32_6 : i32
    %11 = arith.extui %10 : i1 to i32
    %c0_i32_7 = arith.constant 0 : i32
    %12 = arith.cmpi ne, %11, %c0_i32_7 : i32
    scf.if %12 {
      %c0_8 = arith.constant 0 : index
      %c0_9 = arith.constant 0 : index
      %13 = vector.load %arg3[%c0_8, %c0_9] : memref<8x128xf32, #tpu.memory_space<vmem>>, vector<8x128xf32>
      %c0_10 = arith.constant 0 : index
      %c0_11 = arith.constant 0 : index
      %14 = vector.load %arg2[%c0_10, %c0_11] : memref<8x128xf32, #tpu.memory_space<vmem>>, vector<8x128xf32>
      tpu.vector_store %arg2[%c0_10, %c0_11], %13 {strides = array<i32>} : memref<8x128xf32, #tpu.memory_space<vmem>>, vector<8x128xf32>,
    } else {
    }
    return
  }
  func.func @transform_0(%arg0: i32) -> (i32, i32) {
    %c0_i32 = arith.constant 0 : i32
    %c0_i32_0 = arith.constant 0 : i32
    return %arg0, %c0_i32 : i32, i32
  }
  func.func @transform_1(%arg0: i32) -> (i32, i32) {
    %c0_i32 = arith.constant 0 : i32
    %c0_i32_0 = arith.constant 0 : i32
    %c0_i32_1 = arith.constant 0 : i32
    return %c0_i32, %c0_i32_0 : i32, i32
  }
}

</mosaic_0001>

<bundles_post_ra>
// kernel: _sumsq_packed.1
= control target key start
LH: loop header
LB: loop body
LE: loop exit
PB: predicated region body
PF: predicated region fallthrough
CT: control target
= control target key end

     0   :  { %6 = vsyncpa [#allocation4], 0  ;;  %s82_s6 = smov [#allocation3]   ;;  %s101_s0 = inlined_call_operand.hbm [shape: f32[48,128], index: 0, kind: input, shape index: {}]   ;;  %s102_s1 = inlined_call_operand.vmem [shape: f32[8,128], index: 1, kind: output, shape index: {}]  }
   0x1   :  { %s12_s7 = sshll.u32 %s82_s6, 4  ;;  %s13_s7 = int_to_ptr.vmem [resolvable:$true] %s12_s7 }
   0x2   :  { %s68_s8 = scalar_lea.vmem %s13_s7, 768  ;;  %p73_p1 = scmp.lt.s32.totalorder %s13_s7, %s13_s7 }
   0x3   :  { %p69_p0 = scmp.ne.s32.totalorder %s13_s7, %s68_s8  ;;  %p74_p2 = scmp.lt.s32.totalorder %s68_s8, %s68_s8 }
   0x5   :  { %p75_p3 = por %p74_p2, %p73_p1 }
   0x7   :  { %p76_p4 = pnand %p75_p3, %p69_p0 }
   0x9   :  { %79 = shalt.err (!%p76_p4)
}
   0xa   :  { %s83_s9 = smov 128   ;;  %s84_s10 = smov 8  }
   0xb   :  { %18 = dma.hbm_to_vmem [thread:$0]  %s101_s0, 768, %s13_s7, [#allocation4], %s83_s9, %s83_s9, %s84_s10  }
   0xc   :  { %80 = dma.done.wait [#allocation4], 768  }
   0xd   :  { %81 = vsyncadd [#allocation4], 4294966528  ;;  %v27_v0 = vld [vmem:[#allocation3] sm:$0xff]  ;;  %v28_v1 = vld [vmem:[#allocation3 + $0x8] sm:$0xff] }
   0xe   :  { %v29_v2 = vld [vmem:[#allocation3 + $0x10] sm:$0xff]  ;;  %v30_v3 = vld [vmem:[#allocation3 + $0x18] sm:$0xff]  ;;  %v33_v4 = vmul.f32 %v27_v0, %v27_v0  ;;  %v34_v5 = vmul.f32 %v28_v1, %v28_v1  ;;  %v31_v7 = vld [vmem:[#allocation3 + $0x20] sm:$0xff] }
   0xf   :  { %v35_v6 = vmul.f32 %v29_v2, %v29_v2  ;;  %v36_v8 = vmul.f32 %v30_v3, %v30_v3  ;;  %v32_v10 = vld [vmem:[#allocation3 + $0x28] sm:$0xff]  ;;  %v37_v11 = vmul.f32 %v31_v7, %v31_v7 }
  0x10   :  { %v40_v9 = vadd.f32 %v34_v5, %v33_v4  ;;  %v38_v13 = vmul.f32 %v32_v10, %v32_v10 }
  0x12   :  { %v41_v12 = vadd.f32 %v40_v9, %v35_v6 }
  0x14   :  { %v42_v14 = vadd.f32 %v41_v12, %v36_v8 }
  0x16   :  { %v43_v15 = vadd.f32 %v42_v14, %v37_v11 }
  0x18   :  { %v44_v16 = vadd.f32 %v43_v15, %v38_v13 }
  0x1a   :  { %51 = vst [vmem:[%s102_s1] sm:$0xff] %v44_v16 }
  0x1b   :  { %56 = vsyncpa [#allocation4], 1 }

</bundles_post_ra>
